<compile_context>
chip_gen: v7x
topology: tpu7x:2x2x1
jax: 0.10.0
libtpu: 0.0.40
codegen_flags: <defaults>
</compile_context>

<pallas_src>
import jax
import jax.numpy as jnp
from jax.experimental import pallas as pl
from jax.experimental.pallas import tpu as pltpu


def _make_tss_kernel(d, k):
    """Kernel over (blk, k*2*d) text/out tiles and (blk, k*d) object tiles.

    Lane block j of a tile row corresponds to original (flattened) row
    k*R + j: text/out hold the (even, odd) token-embedding pair, the four
    small inputs hold the shared object/box/ocr embedding of that row.
    """

    def kernel(text_ref, obj_ref, objb_ref, ocr_ref, ocrb_ref, out_ref):
        # 4-way sum once per row; reused for both halves of the pair slab.
        s = obj_ref[...] + objb_ref[...] + ocr_ref[...] + ocrb_ref[...]
        for j in range(k):
            sj = s if k == 1 else s[:, j * d:(j + 1) * d]
            base = 2 * d * j
            # extended[:, 0::2] = x ; extended[:, 1::2] = x  <=>  add the same
            # sum to both contiguous halves (even-token, odd-token) of the
            # pair slab.  Halves are read directly from the ref (no full-tile
            # temp -> lower vreg pressure at large blocks).
            out_ref[:, base:base + d] = text_ref[:, base:base + d] + sj
            out_ref[:, base + d:base + 2 * d] = (
                text_ref[:, base + d:base + 2 * d] + sj)

    return kernel


def _vmem_budget_and_limit():
    """Generation-aware VMEM sizing (v5e/v6e: 128 MiB, v7x: 64 MiB per TC)."""
    try:
        cap = int(pltpu.get_tpu_info().vmem_capacity_bytes)
    except Exception:  # older jax / no device info: assume smallest (v7x) VMEM
        cap = 64 * 1024 * 1024
    budget = (cap * 3) // 8        # target for the double-buffered working set
    limit = budget + cap // 4      # explicit scoped-VMEM limit with headroom
    return budget, limit


def _pick_row_block(total_rows, pipelined_row_bytes, budget):
    """Largest 8-aligned fused-row block under the double-buffered budget."""
    blk = max(8, budget // max(1, pipelined_row_bytes))
    blk = (blk // 8) * 8
    blk = min(blk, total_rows)
    # >= 4 grid steps when possible (v7x: 2 TCs x double-buffer overlap), but
    # never shrink below ~512 rows: 512-row tiles sit at ~85% of HBM roofline,
    # and on 1-TC v5e/v6e extra steps only add per-step overhead.
    min_rows, target_steps = 512, 4
    if total_rows // max(1, blk) < target_steps:
        step_blk = max(min_rows, pl.cdiv(total_rows, target_steps))
        step_blk = pl.cdiv(step_blk, 8) * 8
        blk = min(blk, step_blk)
    blk = max(1, min(blk, total_rows))
    # Prefer a block that divides total_rows evenly (no masked ragged tail).
    if total_rows % blk != 0:
        for cand in range(blk, max(7, blk // 2), -1):
            if cand % 8 == 0 and total_rows % cand == 0:
                blk = cand
                break
    return int(blk)


@jax.jit
def text_semantic_separate(text_ids, emb_table, obj_emb, obj_box_emb,
                           ocr_emb, ocr_box_emb):
    """Pallas implementation of TextSemanticSeparate.forward.

    text_ids:   (bs, 2n) int32 token ids (tokenizer output, host-side glue)
    emb_table:  (vocab, d) frozen embedding table (t5.shared surrogate)
    obj_emb, obj_box_emb, ocr_emb, ocr_box_emb: (bs, n, d) float
    returns:    (bs, 2n, d) float
    """
    bs, n, d = obj_emb.shape
    dtype = obj_emb.dtype

    # Frozen embedding lookup (the module's self.ocr_embedding) — kept in XLA,
    # see header comment for why fusing it into the kernel would lose.
    text_emb = jnp.take(emb_table, text_ids, axis=0).astype(dtype)
    two_n = text_emb.shape[1]
    assert two_n == 2 * n, "interleaved text length must be 2 * n_obj"

    rows = bs * n
    # Lane-density fold: make the output tile's last dim a multiple of 128.
    if (2 * d) % 128 == 0:
        k = 1
    elif 128 % (2 * d) == 0 and rows % (128 // (2 * d)) == 0:
        k = 128 // (2 * d)
    else:
        k = 1  # still correct; writeback just uses masked partial stores
    fr = rows // k

    # All reshapes below are free, contiguous metadata reshapes in HBM.
    text_2d = text_emb.reshape(fr, k * 2 * d)
    obj_2d = obj_emb.reshape(fr, k * d)
    objb_2d = obj_box_emb.reshape(fr, k * d)
    ocr_2d = ocr_emb.reshape(fr, k * d)
    ocrb_2d = ocr_box_emb.reshape(fr, k * d)

    itemsize = jnp.dtype(dtype).itemsize
    budget, vmem_limit = _vmem_budget_and_limit()
    # Pipeline holds text (k*2d) + out (k*2d) + 4x (k*d) per row, x2 buffers.
    pipelined_row_bytes = 2 * (8 * k * d) * itemsize
    blk = _pick_row_block(fr, pipelined_row_bytes, budget)
    grid = (pl.cdiv(fr, blk),)

    big_spec = pl.BlockSpec((blk, k * 2 * d), lambda i: (i, 0))
    small_spec = pl.BlockSpec((blk, k * d), lambda i: (i, 0))

    n0 = bs * n * d
    cost = pl.CostEstimate(flops=5 * n0, transcendentals=0,
                           bytes_accessed=8 * n0 * itemsize)

    out_2d = pl.pallas_call(
        _make_tss_kernel(d, k),
        out_shape=jax.ShapeDtypeStruct((fr, k * 2 * d), dtype),
        grid=grid,
        in_specs=[big_spec, small_spec, small_spec, small_spec, small_spec],
        out_specs=big_spec,
        input_output_aliases={0: 0},   # reuse the gathered text buffer
        cost_estimate=cost,
        compiler_params=pltpu.CompilerParams(
            dimension_semantics=("parallel",),
            vmem_limit_bytes=vmem_limit),
    )(text_2d, obj_2d, objb_2d, ocr_2d, ocrb_2d)

    return out_2d.reshape(bs, two_n, d)


def _reference(text_ids, emb_table, obj_emb, obj_box_emb, ocr_emb, ocr_box_emb):
    text_emb = jnp.take(emb_table, text_ids, axis=0).astype(obj_emb.dtype)
    ext = lambda x: jnp.repeat(x, 2, axis=1)  # extended[:,0::2]=extended[:,1::2]=x
    return text_emb + ext(obj_emb) + ext(obj_box_emb) + ext(ocr_emb) + ext(ocr_box_emb)


if __name__ == "__main__":
    key = jax.random.PRNGKey(0)

    def run_case(bs, n, d, vocab):
        ks = jax.random.split(jax.random.fold_in(key, d), 6)
        emb_table = jax.random.normal(ks[0], (vocab, d), dtype=jnp.float32)
        text_ids = jax.random.randint(ks[1], (bs, 2 * n), 0, vocab,
                                      dtype=jnp.int32)
        obj = jax.random.normal(ks[2], (bs, n, d), dtype=jnp.float32)
        objb = jax.random.normal(ks[3], (bs, n, d), dtype=jnp.float32)
        ocr = jax.random.normal(ks[4], (bs, n, d), dtype=jnp.float32)
        ocrb = jax.random.normal(ks[5], (bs, n, d), dtype=jnp.float32)

        out = jax.block_until_ready(
            text_semantic_separate(text_ids, emb_table, obj, objb, ocr, ocrb))
        ref = _reference(text_ids, emb_table, obj, objb, ocr, ocrb)
        assert out.shape == (bs, 2 * n, d)
        assert jnp.allclose(out, ref, atol=1e-5, rtol=1e-5)

    # Lane-dense path (2*d == 128, k == 1) and row-fold path (2*d == 64, k == 2).
    run_case(bs=2, n=8, d=64, vocab=64)
    run_case(bs=2, n=8, d=32, vocab=64)

    print("KERNEL_OK")
</pallas_src>

<mosaic_0001>
module attributes {stable_mosaic.version = 11 : i64} {
  func.func @kernel(%arg0: i32, %arg1: memref<16x128xf32, #tpu.memory_space<vmem>>, %arg2: memref<16x64xf32, #tpu.memory_space<vmem>>, %arg3: memref<16x64xf32, #tpu.memory_space<vmem>>, %arg4: memref<16x64xf32, #tpu.memory_space<vmem>>, %arg5: memref<16x64xf32, #tpu.memory_space<vmem>>, %arg6: memref<16x128xf32, #tpu.memory_space<vmem>>) attributes {dimension_semantics = [#tpu.dimension_semantics<parallel>], iteration_bounds = array<i64: 1>, scalar_prefetch = 0 : i64, scratch_operands = 0 : i64, tpu.core_type = #tpu.core_type<tc>, window_params = [{transform_indices = @transform_0, window_bounds = array<i64: 16, 128>}, {transform_indices = @transform_1, window_bounds = array<i64: 16, 64>}, {transform_indices = @transform_2, window_bounds = array<i64: 16, 64>}, {transform_indices = @transform_3, window_bounds = array<i64: 16, 64>}, {transform_indices = @transform_4, window_bounds = array<i64: 16, 64>}, {transform_indices = @transform_5, window_bounds = array<i64: 16, 128>}]} {
    %c0 = arith.constant 0 : index
    %c0_0 = arith.constant 0 : index
    %0 = vector.load %arg2[%c0, %c0_0] : memref<16x64xf32, #tpu.memory_space<vmem>>, vector<16x64xf32>
    %c0_1 = arith.constant 0 : index
    %c0_2 = arith.constant 0 : index
    %1 = vector.load %arg3[%c0_1, %c0_2] : memref<16x64xf32, #tpu.memory_space<vmem>>, vector<16x64xf32>
    %2 = arith.addf %0, %1 : vector<16x64xf32>
    %c0_3 = arith.constant 0 : index
    %c0_4 = arith.constant 0 : index
    %3 = vector.load %arg4[%c0_3, %c0_4] : memref<16x64xf32, #tpu.memory_space<vmem>>, vector<16x64xf32>
    %4 = arith.addf %2, %3 : vector<16x64xf32>
    %c0_5 = arith.constant 0 : index
    %c0_6 = arith.constant 0 : index
    %5 = vector.load %arg5[%c0_5, %c0_6] : memref<16x64xf32, #tpu.memory_space<vmem>>, vector<16x64xf32>
    %6 = arith.addf %4, %5 : vector<16x64xf32>
    %c0_7 = arith.constant 0 : index
    %c0_8 = arith.constant 0 : index
    %7 = vector.load %arg1[%c0_7, %c0_8] : memref<16x128xf32, #tpu.memory_space<vmem>>, vector<16x64xf32>
    %8 = arith.addf %7, %6 : vector<16x64xf32>
    %c0_9 = arith.constant 0 : index
    %c0_10 = arith.constant 0 : index
    %9 = vector.load %arg6[%c0_9, %c0_10] : memref<16x128xf32, #tpu.memory_space<vmem>>, vector<16x64xf32>
    tpu.vector_store %arg6[%c0_9, %c0_10], %8 {strides = array<i32>} : memref<16x128xf32, #tpu.memory_space<vmem>>, vector<16x64xf32>,
    %c0_11 = arith.constant 0 : index
    %c64 = arith.constant 64 : index
    %10 = vector.load %arg1[%c0_11, %c64] : memref<16x128xf32, #tpu.memory_space<vmem>>, vector<16x64xf32>
    %11 = arith.addf %10, %6 : vector<16x64xf32>
    %c0_12 = arith.constant 0 : index
    %c64_13 = arith.constant 64 : index
    %12 = vector.load %arg6[%c0_12, %c64_13] : memref<16x128xf32, #tpu.memory_space<vmem>>, vector<16x64xf32>
    tpu.vector_store %arg6[%c0_12, %c64_13], %11 {strides = array<i32>} : memref<16x128xf32, #tpu.memory_space<vmem>>, vector<16x64xf32>,
    return
  }
  func.func @transform_0(%arg0: i32) -> (i32, i32) {
    %c0_i32 = arith.constant 0 : i32
    %c0_i32_0 = arith.constant 0 : i32
    return %arg0, %c0_i32 : i32, i32
  }
  func.func @transform_1(%arg0: i32) -> (i32, i32) {
    %c0_i32 = arith.constant 0 : i32
    %c0_i32_0 = arith.constant 0 : i32
    return %arg0, %c0_i32 : i32, i32
  }
  func.func @transform_2(%arg0: i32) -> (i32, i32) {
    %c0_i32 = arith.constant 0 : i32
    %c0_i32_0 = arith.constant 0 : i32
    return %arg0, %c0_i32 : i32, i32
  }
  func.func @transform_3(%arg0: i32) -> (i32, i32) {
    %c0_i32 = arith.constant 0 : i32
    %c0_i32_0 = arith.constant 0 : i32
    return %arg0, %c0_i32 : i32, i32
  }
  func.func @transform_4(%arg0: i32) -> (i32, i32) {
    %c0_i32 = arith.constant 0 : i32
    %c0_i32_0 = arith.constant 0 : i32
    return %arg0, %c0_i32 : i32, i32
  }
  func.func @transform_5(%arg0: i32) -> (i32, i32) {
    %c0_i32 = arith.constant 0 : i32
    %c0_i32_0 = arith.constant 0 : i32
    return %arg0, %c0_i32 : i32, i32
  }
}

</mosaic_0001>

<bundles_post_ra>
// kernel: text_semantic_separate.1
= control target key start
LH: loop header
LB: loop body
LE: loop exit
PB: predicated region body
PF: predicated region fallthrough
CT: control target
= control target key end

     0   :  { %vm38_vm0 = vcmask 523264   ;;  %vm53_vm1 = vcmask 1048064   ;;  %s140_s1 = inlined_call_operand.vmem [shape: f32[16,64], index: 1, kind: input, shape index: {}]   ;;  %s141_s2 = inlined_call_operand.vmem [shape: f32[16,64], index: 2, kind: input, shape index: {}]   ;;  %s142_s3 = inlined_call_operand.vmem [shape: f32[16,64], index: 3, kind: input, shape index: {}]   ;;  %s143_s4 = inlined_call_operand.vmem [shape: f32[16,64], index: 4, kind: input, shape index: {}]   ;;  %s144_s0 = inlined_call_operand.vmem [shape: f32[16,128], index: 0, kind: input, shape index: {}, may-alias: {0,5}]   ;;  %s145_s5 = inlined_call_operand.vmem [shape: f32[16,128], index: 5, kind: output, shape index: {}, may-alias: {0,5}]  }
   0x1   :  { %v20_v0 = vld [vmem:[%s140_s1] sm:$0xff]  ;;  %v21_v1 = vld [vmem:[%s140_s1 + $0x8] sm:$0xff] }
   0x2   :  { %v22_v2 = vld [vmem:[%s141_s2] sm:$0xff]  ;;  %v23_v3 = vld [vmem:[%s141_s2 + $0x8] sm:$0xff] }
   0x3   :  { %v24_v4 = vadd.f32 %v22_v2, %v20_v0  ;;  %v26_v5 = vld [vmem:[%s142_s3] sm:$0xff]  ;;  %v27_v6 = vld [vmem:[%s142_s3 + $0x8] sm:$0xff]  ;;  %v25_v8 = vadd.f32 %v23_v3, %v21_v1  ;;  %s61_s3 = smov 64  }
   0x4   :  { %v30_v7 = vld [vmem:[%s143_s4] sm:$0xff]  ;;  %v31_v10 = vld [vmem:[%s143_s4 + $0x8] sm:$0xff] }
   0x5   :  { %v28_v9 = vadd.f32 %v26_v5, %v24_v4  ;;  %v34_v11 = vld [vmem:[%s144_s0] sm:$0xff]  ;;  %v29_v12 = vadd.f32 %v27_v6, %v25_v8  ;;  %v35_v14 = vld [vmem:[%s144_s0 + $0x8] sm:$0xff] }
   0x7   :  { %v32_v13 = vadd.f32 %v30_v7, %v28_v9  ;;  %v33_v15 = vadd.f32 %v31_v10, %v29_v12 }
   0x9   :  { %45 = vrot.lane.b32.xlu0 %v32_v13, %s61_s3  ;;  %v36_v16 = vadd.f32 %v34_v11, %v32_v13  ;;  %v37_v17 = vadd.f32 %v35_v14, %v33_v15 }
   0xb   :  { %39 = vst.msk [vmem:[%s145_s5] sm:$0xff] %vm38_vm0, %v36_v16  ;;  %40 = vst.msk [vmem:[%s145_s5 + $0x8] sm:$0xff] %vm38_vm0, %v37_v17 }
   0xd   :  { %47 = vrot.lane.b32.xlu0 %v33_v15, %s61_s3 }
  0x12   :  { %v41_v18 = vld [vmem:[%s144_s0] sm:$0xff]  ;;  %v42_v21 = vld [vmem:[%s144_s0 + $0x8] sm:$0xff] }
  0x7b   :  { %v46_v19 = vpop.permute.xlu0 %45 }
  0x7c   :  { %v51_v20 = vadd.f32 %v46_v19, %v41_v18 }
  0x7e   :  { %54 = vst.msk [vmem:[%s145_s5] sm:$0xff] %vm53_vm1, %v51_v20 }
  0x7f   :  { %v48_v22 = vpop.permute.xlu0 %47 }
  0x80   :  { %v52_v23 = vadd.f32 %v48_v22, %v42_v21 }
  0x82   :  { %55 = vst.msk [vmem:[%s145_s5 + $0x8] sm:$0xff] %vm53_vm1, %v52_v23 }

</bundles_post_ra>
